<compile_context>
chip_gen: v7x
topology: tpu7x:2x2x1
jax: 0.10.0
libtpu: 0.0.40
codegen_flags: <defaults>
</compile_context>

<pallas_src>
import jax
import jax.numpy as jnp
from jax.experimental import pallas as pl
from jax.experimental.pallas import tpu as pltpu


def _fuser_kernel(scale_ref,   # SMEM (B,)      per-batch camera gate 2*(1-g)
                  cols_ref,    # (1, K, Nt)     bf16 im2col patch tile
                  w_ref,       # (Cout, K)      f32 weights, BN scale folded
                  mask_ref,    # (1, K)         f32: 1.0 on camera (x1) cols
                  bias_ref,    # (Cout, 1)      f32 folded BN bias
                  o_ref):      # (1, Cout, Nt)  f32 output tile
    s = scale_ref[pl.program_id(0)]
    # Fold the per-batch gate into the camera columns of the (tiny) weight
    # tile instead of rescaling the activations for every tap.
    w = w_ref[...] * (1.0 + (s - 1.0) * mask_ref[...])          # f32 VPU math
    # Single MXU matmul per tile: (Cout, K) @ (K, Nt), K = 9*(C0+C1),
    # bf16 inputs with f32 accumulation.
    acc = jnp.dot(w.astype(jnp.bfloat16), cols_ref[0],
                  preferred_element_type=jnp.float32)
    # Folded BN bias + ReLU epilogue (f32), lane-dense store.
    o_ref[0] = jnp.maximum(acc + bias_ref[...], 0.0).astype(o_ref.dtype)


def _im2col_3x3(x_nchw):
    """NCHW -> (B, 9*C, H*W) patch matrix for a 3x3 conv with padding=1.

    K-axis ordering is (kh, kw, c), matching the weight reshape in the
    wrapper.  Done once in the wrapper so the kernel never touches strided
    windows.
    """
    B, C, H, W = x_nchw.shape
    xp = jnp.pad(x_nchw, ((0, 0), (0, 0), (1, 1), (1, 1)))
    taps = [xp[:, :, kh:kh + H, kw:kw + W]
            for kh in range(3) for kw in range(3)]                # 9 x (B,C,H,W)
    return jnp.stack(taps, axis=1).reshape(B, 9 * C, H * W)


def conv_fuser_forward(inputs, context, params, *, block_n=128):
    """inputs: [x0_nchw, x1_nchw]; context: (B, 1, 3) int conditions."""
    x0, x1 = inputs                              # stay channel-major (NCHW)
    B, C0, H, W = x0.shape
    C1 = x1.shape[1]
    Cout = params["w_oihw"].shape[0]
    N = H * W
    K = 9 * (C0 + C1)

    # --- gating head: tiny (B,3)@(3,1) linear + sigmoid (plain-JAX glue) ----
    night = context[:, 0, :3].astype(jnp.float32)
    gate = jax.nn.sigmoid(night @ params["gating_w"].T)          # (B, 1)
    scale = (2.0 * (1.0 - gate)).reshape(B).astype(jnp.float32)  # (B,)

    # --- im2col patch matrices (bf16 for HBM/MXU), K sublanes x H*W lanes ---
    cols = jnp.concatenate([_im2col_3x3(x0), _im2col_3x3(x1)], axis=1)
    cols = cols.astype(jnp.bfloat16)                             # (B, K, N)
    n_pad = pl.cdiv(N, block_n) * block_n
    if n_pad != N:
        cols = jnp.pad(cols, ((0, 0), (0, 0), (0, n_pad - N)))

    # --- fold eval-mode BN scale into the conv weights; keep only the bias --
    eps = 1e-5
    bn_scale = params["bn_gamma"] / jnp.sqrt(params["bn_var"] + eps)   # (Cout,)
    bias = (params["bn_beta"] - params["bn_mean"] * bn_scale).reshape(Cout, 1)
    bias = bias.astype(jnp.float32)
    w0 = jnp.transpose(params["w_oihw"][:, :C0], (0, 2, 3, 1)).reshape(Cout, 9 * C0)
    w1 = jnp.transpose(params["w_oihw"][:, C0:], (0, 2, 3, 1)).reshape(Cout, 9 * C1)
    w_all = (jnp.concatenate([w0, w1], axis=1) * bn_scale[:, None]
             ).astype(jnp.float32)                               # (Cout, K)
    x1_mask = jnp.concatenate(
        [jnp.zeros((9 * C0,), jnp.float32), jnp.ones((9 * C1,), jnp.float32)]
    ).reshape(1, K)

    # --- pallas call: grid over (batch, spatial tiles), both parallel --------
    grid = (B, n_pad // block_n)
    grid_spec = pltpu.PrefetchScalarGridSpec(
        num_scalar_prefetch=1,                   # gate scale lives in SMEM
        grid=grid,
        in_specs=[
            pl.BlockSpec((1, K, block_n), lambda b, n, s: (b, 0, n)),
            pl.BlockSpec((Cout, K), lambda b, n, s: (0, 0)),
            pl.BlockSpec((1, K), lambda b, n, s: (0, 0)),
            pl.BlockSpec((Cout, 1), lambda b, n, s: (0, 0)),
        ],
        out_specs=pl.BlockSpec((1, Cout, block_n), lambda b, n, s: (b, 0, n)),
    )
    out_flat = pl.pallas_call(
        _fuser_kernel,
        out_shape=jax.ShapeDtypeStruct((B, Cout, n_pad), jnp.float32),
        grid_spec=grid_spec,
        compiler_params=pltpu.CompilerParams(
            dimension_semantics=("parallel", "parallel")),
    )(scale, cols, w_all, x1_mask, bias)

    # Channel-major output: slice the lane padding, free reshape to NCHW.
    return out_flat[:, :, :N].reshape(B, Cout, H, W)


def _reference(inputs, context, params):
    """Plain-JAX reference mirroring the PyTorch forward (eval-mode BN)."""
    x0, x1 = inputs
    night = context[:, 0, :3].astype(jnp.float32)
    gate = jax.nn.sigmoid(night @ params["gating_w"].T)
    x1 = x1 * (2.0 * (1.0 - gate))[:, :, None, None]
    x = jnp.concatenate([x0, x1], axis=1)
    y = jax.lax.conv_general_dilated(
        x, params["w_oihw"], (1, 1), "SAME",
        dimension_numbers=("NCHW", "OIHW", "NCHW"),
        precision=jax.lax.Precision.HIGHEST)
    eps = 1e-5
    g = params["bn_gamma"][None, :, None, None]
    b = params["bn_beta"][None, :, None, None]
    m = params["bn_mean"][None, :, None, None]
    v = params["bn_var"][None, :, None, None]
    y = g * (y - m) / jnp.sqrt(v + eps) + b
    return jnp.maximum(y, 0.0)


if __name__ == "__main__":
    # Small shapes consistent with the module:
    #   in_channels = [4, 4] (lidar feats, camera feats), out_channels = 8
    B, C0, C1, Cout, H, W = 2, 4, 4, 8, 16, 16

    key = jax.random.PRNGKey(0)
    k0, k1, kw = jax.random.split(key, 3)

    x0 = jax.random.normal(k0, (B, C0, H, W), jnp.float32)      # inputs[0]
    x1 = jax.random.normal(k1, (B, C1, H, W), jnp.float32)      # inputs[1] (camera)
    context = jnp.array([[[1, 0, 1]], [[0, 1, 0]]], jnp.int32)  # (B, 1, 3)

    w_oihw = 0.05 * jax.random.normal(kw, (Cout, C0 + C1, 3, 3), jnp.float32)
    params = {
        "gating_w": jnp.full((1, 3), 1.735, jnp.float32),       # Linear(3,1) const init
        "w_oihw": w_oihw,                                       # Conv2d weight (OIHW)
        "bn_gamma": 1.0 + 0.1 * jnp.arange(Cout, dtype=jnp.float32),
        "bn_beta": 0.05 * jnp.arange(Cout, dtype=jnp.float32),
        "bn_mean": jnp.zeros((Cout,), jnp.float32),
        "bn_var": jnp.ones((Cout,), jnp.float32),
    }

    out = conv_fuser_forward([x0, x1], context, params)
    out = jax.block_until_ready(out)

    ref = jax.block_until_ready(_reference([x0, x1], context, params))
    assert out.shape == (B, Cout, H, W), out.shape
    # Kernel feeds the MXU bf16 activations/weights (f32 accumulate); the
    # reference is f32 HIGHEST-precision, so tolerance is a little wider.
    assert jnp.allclose(out, ref, atol=2e-2, rtol=2e-2), \
        float(jnp.max(jnp.abs(out - ref)))

    print("KERNEL_OK")
</pallas_src>

<mosaic_0001>
module attributes {stable_mosaic.version = 11 : i64} {
  func.func @_fuser_kernel(%arg0: i32, %arg1: i32, %arg2: memref<2xf32, #tpu.memory_space<smem>>, %arg3: memref<1x72x128xbf16, #tpu.memory_space<vmem>>, %arg4: memref<8x72xf32, #tpu.memory_space<vmem>>, %arg5: memref<1x72xf32, #tpu.memory_space<vmem>>, %arg6: memref<8x1xf32, #tpu.memory_space<vmem>>, %arg7: memref<1x8x128xf32, #tpu.memory_space<vmem>>) attributes {dimension_semantics = [#tpu.dimension_semantics<parallel>, #tpu.dimension_semantics<parallel>], iteration_bounds = array<i64: 2, 2>, scalar_prefetch = 1 : i64, scratch_operands = 0 : i64, tpu.core_type = #tpu.core_type<tc>, window_params = [{transform_indices = @transform_0, window_bounds = array<i64: 1, 72, 128>}, {pipeline_mode = #tpu.pipeline_mode<synchronous>, transform_indices = @transform_1, window_bounds = array<i64: 8, 72>}, {pipeline_mode = #tpu.pipeline_mode<synchronous>, transform_indices = @transform_2, window_bounds = array<i64: 1, 72>}, {pipeline_mode = #tpu.pipeline_mode<synchronous>, transform_indices = @transform_3, window_bounds = array<i64: 8, 1>}, {transform_indices = @transform_4, window_bounds = array<i64: 1, 8, 128>}]} {
    %0 = arith.index_cast %arg0 : i32 to index
    %1 = memref.load %arg2[%0] : memref<2xf32, #tpu.memory_space<smem>>
    %c0 = arith.constant 0 : index
    %c0_0 = arith.constant 0 : index
    %2 = vector.load %arg4[%c0, %c0_0] : memref<8x72xf32, #tpu.memory_space<vmem>>, vector<8x72xf32>
    %cst = arith.constant 1.000000e+00 : f32
    %3 = arith.subf %1, %cst : f32
    %c0_1 = arith.constant 0 : index
    %c0_2 = arith.constant 0 : index
    %4 = vector.load %arg5[%c0_1, %c0_2] : memref<1x72xf32, #tpu.memory_space<vmem>>, vector<1x72xf32>
    %5 = vector.broadcast %3 : f32 to vector<1x72xf32>
    %6 = arith.mulf %5, %4 : vector<1x72xf32>
    %cst_3 = arith.constant 1.000000e+00 : f32
    %7 = vector.broadcast %cst_3 : f32 to vector<1x72xf32>
    %8 = arith.addf %7, %6 : vector<1x72xf32>
    %9 = vector.broadcast %8 : vector<1x72xf32> to vector<8x72xf32>
    %10 = arith.mulf %2, %9 : vector<8x72xf32>
    %11 = arith.truncf %10 : vector<8x72xf32> to vector<8x72xbf16>
    %c0_4 = arith.constant 0 : index
    %c0_5 = arith.constant 0 : index
    %c0_6 = arith.constant 0 : index
    %12 = vector.load %arg3[%c0_4, %c0_5, %c0_6] : memref<1x72x128xbf16, #tpu.memory_space<vmem>>, vector<1x72x128xbf16>
    %13 = vector.shape_cast %12 : vector<1x72x128xbf16> to vector<72x128xbf16>
    %cst_7 = arith.constant dense<0.000000e+00> : vector<8x128xf32>
    %14 = tpu.matmul %11, %13, %cst_7 {dimension_numbers = #tpu.dot_dimension_numbers<[1], [0], [0], [1], [0, 0, 1, 1], [], []>} : vector<8x72xbf16>, vector<72x128xbf16>, vector<8x128xf32> -> vector<8x128xf32>
    %c0_8 = arith.constant 0 : index
    %c0_9 = arith.constant 0 : index
    %15 = vector.load %arg6[%c0_8, %c0_9] : memref<8x1xf32, #tpu.memory_space<vmem>>, vector<8x1xf32>
    %16 = vector.broadcast %15 : vector<8x1xf32> to vector<8x128xf32>
    %17 = arith.addf %14, %16 : vector<8x128xf32>
    %cst_10 = arith.constant 0.000000e+00 : f32
    %18 = vector.broadcast %cst_10 : f32 to vector<8x128xf32>
    %19 = arith.maximumf %17, %18 : vector<8x128xf32>
    %c0_11 = arith.constant 0 : index
    %c0_12 = arith.constant 0 : index
    %c0_13 = arith.constant 0 : index
    %20 = vector.load %arg7[%c0_11, %c0_12, %c0_13] : memref<1x8x128xf32, #tpu.memory_space<vmem>>, vector<1x8x128xf32>
    %21 = vector.shape_cast %20 : vector<1x8x128xf32> to vector<8x128xf32>
    %22 = vector.shape_cast %19 : vector<8x128xf32> to vector<1x8x128xf32>
    tpu.vector_store %arg7[%c0_11, %c0_12, %c0_13], %22 {strides = array<i32>} : memref<1x8x128xf32, #tpu.memory_space<vmem>>, vector<1x8x128xf32>,
    return
  }
  func.func @transform_0(%arg0: i32, %arg1: i32, %arg2: memref<2xf32, #tpu.memory_space<smem>>) -> (i32, i32, i32) {
    %c0_i32 = arith.constant 0 : i32
    %c0_i32_0 = arith.constant 0 : i32
    return %arg0, %c0_i32, %arg1 : i32, i32, i32
  }
  func.func @transform_1(%arg0: i32, %arg1: i32, %arg2: memref<2xf32, #tpu.memory_space<smem>>) -> (i32, i32) {
    %c0_i32 = arith.constant 0 : i32
    %c0_i32_0 = arith.constant 0 : i32
    %c0_i32_1 = arith.constant 0 : i32
    return %c0_i32, %c0_i32_0 : i32, i32
  }
  func.func @transform_2(%arg0: i32, %arg1: i32, %arg2: memref<2xf32, #tpu.memory_space<smem>>) -> (i32, i32) {
    %c0_i32 = arith.constant 0 : i32
    %c0_i32_0 = arith.constant 0 : i32
    %c0_i32_1 = arith.constant 0 : i32
    return %c0_i32, %c0_i32_0 : i32, i32
  }
  func.func @transform_3(%arg0: i32, %arg1: i32, %arg2: memref<2xf32, #tpu.memory_space<smem>>) -> (i32, i32) {
    %c0_i32 = arith.constant 0 : i32
    %c0_i32_0 = arith.constant 0 : i32
    %c0_i32_1 = arith.constant 0 : i32
    return %c0_i32, %c0_i32_0 : i32, i32
  }
  func.func @transform_4(%arg0: i32, %arg1: i32, %arg2: memref<2xf32, #tpu.memory_space<smem>>) -> (i32, i32, i32) {
    %c0_i32 = arith.constant 0 : i32
    %c0_i32_0 = arith.constant 0 : i32
    return %arg0, %c0_i32, %arg1 : i32, i32, i32
  }
}

</mosaic_0001>

<bundles_post_ra>
// kernel: tpu_custom_call.1
= control target key start
LH: loop header
LB: loop body
LE: loop exit
PB: predicated region body
PF: predicated region fallthrough
CT: control target
= control target key end

     0   :  { %s979_s0 = inlined_call_operand.vmem [shape: f32[2], index: 0, kind: input, shape index: {}]   ;;  %s980_s1 = inlined_call_operand.hbm [shape: bf16[2,72,256], index: 1, kind: input, shape index: {}]   ;;  %s981_s2 = inlined_call_operand.vmem [shape: f32[8,72], index: 2, kind: input, shape index: {}]   ;;  %s982_s3 = inlined_call_operand.vmem [shape: f32[1,72], index: 3, kind: input, shape index: {}]   ;;  %s983_s4 = inlined_call_operand.vmem [shape: f32[8,1], index: 4, kind: input, shape index: {}]   ;;  %s984_s5 = inlined_call_operand.hbm [shape: f32[2,8,256], index: 5, kind: output, shape index: {}]  }
   0x1   :  { %s10_s20 = sshll.u32 %s979_s0, 4  ;;  %s11_s20 = int_to_ptr.vmem [resolvable:$true] %s10_s20 }
   0x2   :  { %s582_s21 = scalar_lea.vmem %s11_s20, 16  ;;  %p587_p1 = scmp.lt.s32.totalorder %s11_s20, %s11_s20 }
   0x3   :  { %p583_p0 = scmp.ne.s32.totalorder %s11_s20, %s582_s21  ;;  %p588_p2 = scmp.lt.s32.totalorder %s582_s21, %s582_s21 }
   0x5   :  { %p589_p3 = por %p588_p2, %p587_p1 }
   0x7   :  { %p590_p4 = pnand %p589_p3, %p583_p0 }
   0x9   :  { %593 = shalt.err (!%p590_p4)  }
   0xa   :  { %s726_s22 = smov [#allocation3]  }
   0xb   :  { %13 = dma.vmem_to_smem %s11_s20, 16, %s726_s22, [#allocation2] }
   0xc   :  { %684 = dma.done.wait [#allocation2], 16 }
   0xd   :  { %685 = vsyncadd [#allocation2], 4294967280 }
   0xe   :  { %15 = sfence }
   0xf   :  { %16 = vsyncpa [#allocation5], 0 }
  0x10   :  { %18 = vsyncpa [#allocation5 + $0x1], 0 }
  0x11   :  { %19 = vsyncpa [#allocation6], 0 }
  0x12   :  { %21 = vsyncpa [#allocation6 + $0x1], 0  ;;  %s768_s23 = smov 0   ;;  %s770_s0 = smov 0  }
  0x13   :  { %s772_s24 = smov 0   ;;  %s774_s25 = smov 0  }
  0x14   :  { %s776_s26 = smov 0   ;;  %s778_s27 = smov 0  }
  0x15   :  { %s780_s28 = smov 0   ;;  %s782_s29 = smov 0  }
  0x16 LB: > { %s449_s30 = sadd.s32 4294967295, %s724_s29   ;;  %s450_s6 = sadd.s32 4294967294, %s724_s29   ;;  %s724_s29 = sphi %s782_s29, %s27_s29   ;;  %s720_s28 = sphi %s780_s28, %s1002_s28   ;;  %s716_s27 = sphi %s778_s27, %s1001_s27   ;;  %s712_s26 = sphi %s776_s26, %s1000_s26   ;;  %s708_s25 = sphi %s774_s25, %s999_s25   ;;  %s704_s24 = sphi %s772_s24, %s998_s24   ;;  %s700_s0 = sphi %s770_s0, %s997_s0   ;;  %s696_s23 = sphi %s768_s23, %s996_s23  }
  0x17   : > { %s36_s7 = sadd.s32 1, %s716_s27  ;;  %s39_s8 = sadd.s32 1, %s720_s28 }
  0x18   : > { %p37_p5 = scmp.ge.s32.totalorder %s36_s7, 2  ;;  %s48_s9 = sadd.s32 1, %s704_s24 }
  0x19   : > { %p55_p6 = scmp.ne.s32.totalorder %s704_s24, %s700_s0  ;;  %p56_p7 = scmp.eq.s32.totalorder %s724_s29, 0 }
  0x1a   : > { %s1004_s7 = smov (%p37_p5, %s36_s7), 0  ;;  %s1006_s8 = smov (!%p37_p5, %s39_s8), %s720_s28 }
  0x1b   : > { %s44_s10 = ssub.s32 %s716_s27, %s1004_s7  ;;  %p821_p8 = por %p56_p7, %p55_p6 }
  0x1c   : > { %p41_p9 = scmp.ge.s32.totalorder %s1006_s8, 2  ;;  %p61_p10 = scmp.ne.s32.totalorder %s700_s0, %s696_s23 }
  0x1d   : > { %p62_p11 = scmp.eq.s32.totalorder %s449_s30, 0  ;;  %p150_p12 = scmp.eq.s32.totalorder %s449_s30, 3 }
  0x1e   : > { %s1008_s8 = smov (%p41_p9, %s1006_s8), 0  ;;  %p156_p1 = scmp.eq.s32.totalorder %s450_s6, 3 }
  0x1f   : > { %988 = sst [smem:[#allocation11_spill]] %s1008_s8  ;;  %p829_p13 = por %p62_p11, %p61_p10 }
  0x20   : > { %p833_p0 = por %p150_p12, %p55_p6  ;;  %s43_s14 = ssub.s32 %s720_s28, %s1008_s8 }
  0x21   : > { %s45_s15 = sor.u32 %s44_s10, %s43_s14  ;;  %p839_p3 = por %p156_p1, %p61_p10 }
  0x22   : > { %s990_s13 = scalar_select %p833_p0, 1, 0 }
  0x23   : > { %p46_p2 = scmp.eq.s32.totalorder %s45_s15, 0  ;;  %p503_p4 = scmp.lt.s32.totalorder %s724_s29, 4 }
  0x24   : > { %s991_s16 = scalar_select %p839_p3, 1, 0 }
  0x25   : > { %s185_s17 = sand.u32 1, %s704_s24   ;;  %s489_s20 = smul.u32 18, %s720_s28 }
  0x26   : > { %s846_s18 = scalar_select %p46_p2, %s704_s24, %s48_s9  }
  0x27   : > { %s488_s19 = smul.u32 36, %s185_s17  ;;  %p851_p5 = pnand %p503_p4, %p821_p8 }
  0x28   : > { %s194_s22 = sadd.s32 %s716_s27, %s489_s20  ;;  %s863_s11 = scalar_lea.sflag [#allocation5], %s185_s17 }
  0x29   : > { %s189_s30 = scalar_lea.vmem [#allocation4], %s488_s19  ;;  %s453_s10 = sshll.u32 %s194_s22, 6 }
  0x2a   : > { %s197_s6 = sshll.u32 %s189_s30, 4  ;;  %s861_s9 = scalar_lea.hbm %s980_s1, %s453_s10  ;;  %s856_s6 = int_to_ptr.vmem [resolvable:$true] %s197_s6 }
  0x2b   : > { %s594_s8 = scalar_lea.hbm %s861_s9, 576  ;;  %p596_p7 = pneg %p851_p5 }
  0x2c   : > { %p595_p6 = scmp.ne.s32.totalorder %s861_s9, %s594_s8  ;;  %s599_s22 = scalar_lea.hbm %s980_s1, 2304 }
  0x2d   : > { %p600_p10 = scmp.lt.u32.totalorder %s861_s9, %s980_s1  ;;  %p601_p11 = scmp.lt.u32.totalorder %s599_s22, %s594_s8 }
  0x2e   : > { %p597_p8 = pnand %p596_p7, %p595_p6  ;;  %p603_p1 = scmp.lt.u32.totalorder %s594_s8, %s861_s9 }
  0x2f   : > { %p602_p12 = por %p601_p11, %p600_p10 }
  0x30   : > { %p598_p9 = pneg %p597_p8 }
  0x31   : > { %p604_p2 = por %p603_p1, %p602_p12 }
  0x33   : > { %p605_p4 = pnand %p604_p2, %p598_p9 }
  0x35   : > { %608 = shalt.err (!%p605_p4)
}
  0x36   : > { %s609_s17 = scalar_lea.vmem %s856_s6, 576  ;;  %s727_s14 = smov [#allocation4]  }
  0x37   : > { %p610_p6 = scmp.ne.s32.totalorder %s856_s6, %s609_s17  ;;  %s614_s15 = sshll.u32 %s727_s14, 4  ;;  %s615_s15 = int_to_ptr.vmem [resolvable:$false] %s614_s15 }
  0x38   : > { %s616_s19 = scalar_lea.vmem %s615_s15, 1152  ;;  %p617_p0 = scmp.lt.s32.totalorder %s856_s6, %s615_s15 }
  0x39   : > { %p612_p8 = pnand %p610_p6, %p596_p7  ;;  %p618_p10 = scmp.lt.s32.totalorder %s616_s19, %s609_s17 }
  0x3b   : > { %p613_p3 = pneg %p612_p8  ;;  %p619_p11 = por %p618_p10, %p617_p0 }
  0x3d   : > { %p620_p12 = pnand %p619_p11, %p613_p3 }
  0x3f   : > { %623 = shalt.err (!%p620_p12)
}
  0x40   : > { %s728_s8 = smov 128   ;;  %s729_s20 = smov 64  }
  0x41   : > { %s730_s22 = smov 4   ;;  %p454_p7 = scmp.ge.s32.totalorder %s724_s29, 1 }
  0x42   : > { %498 = dma.hbm_to_vmem [thread:$0]  (!%p851_p5), %s861_s9, 576, %s856_s6, %s863_s11, %s728_s8, %s729_s20, %s730_s22  }
  0x43   : > { %p205_p9 = scmp.lt.s32.totalorder %s724_s29, 5 }
  0x45   : > { %p206_p1 = pnand %p454_p7, %p205_p9 }
  0x46   : > { %s894_s30 = sand.u32 (!%p206_p1), 1, %s700_s0  }
  0x47   : > { %209 = sbr.rel (%p206_p1) target bundleno = 330 (0x14a), region = 36  ;;  %s212_s17 = scalar_lea.sflag (!%p206_p1), [#allocation5], %s894_s30 }
  0x48   : > { %s490_s10 = smul.u32 (!%p206_p1), 36, %s894_s30 }
  0x4a   : > { %s898_s14 = scalar_lea.vmem (!%p206_p1), [#allocation4], %s490_s10 }
  0x4e   : > { %687 = dma.done.wait (%p829_p13), %s212_s17, 576  }
  0x4f   : > { %689 = vsyncadd (%p829_p13), %s212_s17, 4294966720  ;;  %v731_v0 = vmov 0.0   ;;  %vm732_vm0 = vmmov 0   ;;  %s241_s21 = sld [smem:[#allocation3 + %s712_s26]]  ;;  %v733_v1 = vmov 0   ;;  %v249_v2 = vlaneseq  ;;  %v577_v3 = vld [vmem:[%s898_s14] sm:$0xff]  }
  0x50   : > { %474 = vmatprep.subr.bf16.mxu0 %v731_v0  ;;  %484 = vmatprep.mubr.msk.bf16.mxu0 %vm732_vm0, %v731_v0  ;;  %v578_v4 = vld [vmem:[%s898_s14 + $0x8] sm:$0xff]   ;;  %v244_v7 = vld [vmem:[%s982_s3] sm:$0x1]  ;;  %v579_v9 = vld [vmem:[%s898_s14 + $0x10] sm:$0xff]   ;;  %vm302_vm1 = vcmask 1043456   ;;  %vm298_vm2 = vcmask 588800  }
  0x51   : > { %576 = vset.pattern.permute.xlu0 %v733_v1  ;;  %475 = vmatpush3.bf16.msra.mxu0 %v577_v3  ;;  %v250_v5 = vshrl.u32 %v249_v2, 7  ;;  %v265_v8 = vld [vmem:[%s983_s4] sm:$0xff]  ;;  %s455_s20 = sshll.u32 %s894_s30, 3  ;;  %s464_s22 = sshll.u32 %s712_s26, 1 }
  0x52   : > { %476 = vmatprep.subr.bf16.mxu0 %v731_v0  ;;  %268 = vperm.xlu0 %576, %v265_v8   ;;  %v580_v13 = vld [vmem:[%s898_s14 + $0x18] sm:$0xff]   ;;  %v581_v16 = vld [vmem:[%s898_s14 + $0x20] ss:$0 sps:$4 sm:$0xff]   ;;  %s360_s10 = sadd.s32 %s708_s25, %s464_s22  ;;  %s349_s25 = scalar_lea.sflag [#allocation6], %s894_s30 }
  0x53   : > { %v251_v11 = vsub.s32 0, %v250_v5  ;;  %v242_v14 = vld [vmem:[%s981_s2] sm:$0xff]  ;;  %v304_v18 = vsel %vm302_vm1, %v581_v16, 0  ;;  %s465_s17 = sshll.u32 %s360_s10, 7  ;;  %p993_p0 = scmp.ne.s32.totalorder %s990_s13, 0 }
  0x54   : > { %s925_s9 = scalar_lea.hbm %s984_s5, %s465_s17  ;;  %s734_s11 = smov [#allocation7]  }
  0x55   : > { %s456_s6 = sadd.f32 -1.0, %s241_s21  ;;  %477 = vmatpush3.bf16.msra.mxu0 %v578_v4  ;;  %s239_s21 = scalar_lea.vmem [#allocation7], %s455_s20 }
  0x56   : > { %478 = vmatprep.subr.bf16.mxu0 %v731_v0  ;;  %s628_s15 = sshll.u32 %s734_s11, 4  ;;  %s629_s15 = int_to_ptr.vmem [resolvable:$false] %s628_s15 }
  0x57   : > { %v245_v6 = vstv %s456_s6  ;;  %s364_s6 = sshll.u32 %s239_s21, 4  ;;  %s630_s19 = scalar_lea.vmem %s629_s15, 256  ;;  %s927_s6 = int_to_ptr.vmem [resolvable:$true] %s364_s6 }
  0x58   : > { %v246_v10 = vmul.f32 %v245_v6, %v244_v7  ;;  %s624_s26 = scalar_lea.vmem %s927_s6, 128  ;;  %p631_p2 = scmp.lt.s32.totalorder %s927_s6, %s629_s15 }
  0x59   : > { %479 = vmatpush3.bf16.msra.mxu0 %v579_v9  ;;  %p625_p13 = scmp.ne.s32.totalorder %s927_s6, %s624_s26  ;;  %p632_p4 = scmp.lt.s32.totalorder %s630_s19, %s624_s26 }
  0x5a   : > { %v247_v12 = vadd.f32 1.0, %v246_v10  ;;  %480 = vmatprep.subr.bf16.mxu0 %v731_v0 }
  0x5b   : > { %p626_p3 = pnand %p625_p13, %p993_p0  ;;  %p633_p6 = por %p632_p4, %p631_p2 }
  0x5c   : > { %v252_v15 = vrot.slane %v247_v12, %v251_v11 }
  0x5d   : > { %481 = vmatpush3.bf16.msra.mxu0 %v580_v13  ;;  %p627_p5 = pneg %p626_p3 }
  0x5e   : > { %v254_v17 = vmul.f32 %v252_v15, %v242_v14  ;;  %482 = vmatprep.subr.bf16.mxu0 %v731_v0 }
  0x5f   : > { %p634_p8 = pnand %p633_p6, %p627_p5 }
  0x60   : > { %v255_v19 = vpack.c.bf16 %v254_v17, %v254_v17 }
  0x61   : > { %483 = vmatpush3.bf16.msra.mxu0 %v304_v18 }
  0x64   : > { %485 = vmatmul.mubr.msk.bf16.vlgmr.msra.gmra.mrb[0].mxu0 %vm298_vm2, %v255_v19 }
  0xd1   : > { %v269_v20 = vpop.permute.xlu0 %268 }
 0x137   : > { %v340_v21 = vpop.f32.mrb[0].mxu0 }
 0x138   : > { %v341_v22 = vadd.f32 %v340_v21, %v269_v20  ;;  %v486_v23 = vpop.f32.mrb[1].mxu0 }
 0x139   : > { %v343_v24 = vpop.f32.mrb[2].mxu0 }
 0x13a   : > { %v346_v25 = vmax.f32 %v341_v22, 0.0  ;;  %v487_v26 = vpop.f32.mrb[3].mxu0 }
 0x13c   : > { %347 = vst [vmem:[%s239_s21] sm:$0xff] %v346_v25 }
 0x13d   : > { %637 = shalt.err (!%p634_p8)
}
 0x13e   : > { %s638_s30 = scalar_lea.hbm %s925_s9, 128  ;;  %s642_s22 = scalar_lea.hbm %s984_s5, 512 }
 0x13f   : > { %p639_p10 = scmp.ne.s32.totalorder %s925_s9, %s638_s30  ;;  %p643_p7 = scmp.lt.u32.totalorder %s925_s9, %s984_s5 }
 0x140   : > { %p644_p9 = scmp.lt.u32.totalorder %s642_s22, %s638_s30  ;;  %p646_p13 = scmp.lt.u32.totalorder %s638_s30, %s925_s9 }
 0x141   : > { %p640_p11 = pnand %p639_p10, %p993_p0 }
 0x142   : > { %p645_p1 = por %p644_p9, %p643_p7 }
 0x143   : > { %p641_p12 = pneg %p640_p11 }
 0x144   : > { %p647_p3 = por %p646_p13, %p645_p1 }
 0x146   : > { %p648_p5 = pnand %p647_p3, %p641_p12 }
 0x148   : > { %651 = shalt.err (!%p648_p5)
}
 0x149   : > { %493 = dma.vmem_to_hbm [thread:$0]  (%p993_p0), %s927_s6, 128, %s925_s9, %s349_s25  }
 0x14a PF: > { %p504_p2 = scmp.ge.s32.totalorder %s724_s29, 2  ;;  %s376_s21 = sand.u32 1, %s696_s23  }
 0x14b   : > { %p994_p4 = scmp.ne.s32.totalorder %s991_s16, 0  ;;  %s377_s14 = scalar_lea.sflag [#allocation6], %s376_s21 }
 0x14d   : > { %p500_p6 = pnand %p504_p2, %p994_p4 }
 0x14f   : > { %691 = dma.done.wait (!%p500_p6), %s377_s14, 128  }
 0x150   : > { %693 = vsyncadd (!%p500_p6), %s377_s14, 4294967168  ;;  %s27_s29 = sadd.s32 1, %s724_s29   ;;  %s995_s13 = sld [smem:[#allocation11_spill]] }
 0x151   : > { %p24_p8 = scmp.ge.s32.totalorder %s27_s29, 6   ;;  %s996_s23 = smov %s700_s0 }
 0x152   : > { %s997_s0 = smov %s704_s24  ;;  %s998_s24 = smov %s846_s18 }
 0x153   : > { %s999_s25 = smov %s716_s27  ;;  %s1000_s26 = smov %s720_s28 }
 0x154   : > { %s1001_s27 = smov %s1004_s7  ;;  %26 = sbr.rel (!%p24_p8) target bundleno = 22 (0x16), region = 81 }
 0x156   : > { %s1002_s28 = smov %s995_s13 }
 0x15b   :  { %382 = vsyncpa [#allocation5], 1 }
 0x15c   :  { %384 = vsyncpa [#allocation5 + $0x1], 1 }
 0x15d   :  { %385 = vsyncpa [#allocation6], 1 }
 0x15e   :  { %387 = vsyncpa [#allocation6 + $0x1], 1 }

</bundles_post_ra>
